<compile_context>
chip_gen: v7x
topology: tpu7x:2x2x1
jax: 0.10.0
libtpu: 0.0.40
codegen_flags: <defaults>
</compile_context>

<pallas_src>
import functools

import jax
import jax.numpy as jnp
from jax import lax
from jax.experimental import pallas as pl
from jax.experimental.pallas import tpu as pltpu


def _lstm_kernel(xproj_ref, whh_ref, wfc_ref, bfc_ref, out_ref, h_scr, c_scr):
    """One (batch-block, time-chunk) grid step of the LSTM recurrence.

    xproj_ref : (Tc, BB, 4H)  precomputed x_t @ W_ih^T + (b_ih + b_hh),
                              g-gate columns pre-scaled by 2
    whh_ref   : (H, 4H)       W_hh^T (g-gate columns pre-scaled by 2)
    wfc_ref   : (H, Op)       W_fc^T zero-padded to a lane-dense Op
    bfc_ref   : (1, Op)       b_fc padded with -1e30 filler
    out_ref   : (BB, Op)      padded log-probabilities (lane-dense store)
    h_scr/c_scr : (BB, H)     persistent hidden / cell state across time chunks

    Gate order follows PyTorch nn.LSTM: i, f, g, o.
    """
    t_blk = pl.program_id(1)

    @pl.when(t_blk == 0)
    def _init():
        h_scr[...] = jnp.zeros_like(h_scr)
        c_scr[...] = jnp.zeros_like(c_scr)

    Tc = xproj_ref.shape[0]
    H = whh_ref.shape[0]

    # Hoist the recurrent-weight load out of the time loop (one vld per grid
    # step instead of one per timestep).
    # TODO(synk): if a bundle dump shows per-step MXU push->pop latency still
    # dominates, hold W_hh^T stationary with pltpu.matmul_push_rhs /
    # matmul_acc_lhs / matmul_pop (or a VPU rank-1 fallback on v6e).
    whh = whh_ref[...]

    def step(t, carry):
        h, c = carry
        # Only the recurrent matmul is on the serial critical path.
        gates = (xproj_ref[t].astype(jnp.float32)
                 + jnp.dot(h, whh, preferred_element_type=jnp.float32))
        # One EUP sigmoid over the whole (BB, 4H) vreg covers all four gates;
        # the g gate uses tanh(x) = 2*sigmoid(2x) - 1 (its pre-activation was
        # pre-scaled by 2 in the wrapper).  -> 2 EUP pushes/step (was 5).
        s = jax.nn.sigmoid(gates)
        i_g = s[:, 0 * H:1 * H]
        f_g = s[:, 1 * H:2 * H]
        g_g = 2.0 * s[:, 2 * H:3 * H] - 1.0
        o_g = s[:, 3 * H:4 * H]
        c = f_g * c + i_g * g_g
        h = o_g * jnp.tanh(c)
        return h, c

    h, c = lax.fori_loop(0, Tc, step, (h_scr[...], c_scr[...]),
                         unroll=min(8, Tc))

    h_scr[...] = h
    c_scr[...] = c

    @pl.when(t_blk == pl.num_programs(1) - 1)
    def _finalize():
        # Final FC + log-softmax over dim 1 on the padded lane-dense tile.
        # Padded logit columns carry -1e30 (exp underflows to 0) so the
        # log-sum-exp over the real columns is unaffected.
        logits = (jnp.dot(h, wfc_ref[...], preferred_element_type=jnp.float32)
                  + bfc_ref[...])
        m = jnp.max(logits, axis=1, keepdims=True)
        lse = jnp.log(jnp.sum(jnp.exp(logits - m), axis=1, keepdims=True)) + m
        out_ref[...] = logits - lse


@functools.partial(jax.jit, static_argnames=("xproj_dtype", "time_chunk"))
def lstm_forward(tokens, params, *, xproj_dtype=jnp.float32, time_chunk=256):
    """Equivalent of the PyTorch LSTM module's forward pass.

    tokens: (B, T) int32 token ids.
    Returns (B, output_size) log-probabilities.
    """
    B, T = tokens.shape
    H = params["embedding"].shape[1]
    O = params["b_fc"].shape[0]
    assert O >= 1  # the -1e30 logit-filler trick needs >= 1 real column

    BB = 8                                    # batch block = one sublane group
    Bp = ((B + BB - 1) // BB) * BB            # sublane-pad the batch
    Op = ((O + 127) // 128) * 128             # lane-dense output tile
    Tc = min(T, time_chunk)                   # time-chunk streamed per grid step
    Tp = ((T + Tc - 1) // Tc) * Tc            # time padded (at the FRONT)

    # g-gate pre-scaling: tanh(x) = 2*sigmoid(2x) - 1, so scale the g rows of
    # W_ih / W_hh and the g slice of the summed bias by 2.
    gate_scale = jnp.ones((4 * H, 1), jnp.float32).at[2 * H:3 * H].set(2.0)
    w_ih = params["w_ih"].astype(jnp.float32) * gate_scale          # (4H, H)
    w_hh = params["w_hh"].astype(jnp.float32) * gate_scale          # (4H, H)
    bias = (params["b_ih"] + params["b_hh"]).astype(jnp.float32) * gate_scale[:, 0]

    # Embedding gather stays in XLA (glue).  Gather in time-major order so the
    # big x_proj tensor never needs an HBM transpose (only the tiny int32
    # token matrix is transposed).
    emb_t = params["embedding"][tokens.T].astype(jnp.float32)       # (T, B, H)

    # Hoist the non-recurrent input projection out of the time loop.
    x_proj = jnp.einsum("tbh,gh->tbg", emb_t, w_ih) + bias          # (T, B, 4H)
    # Front-pad the time axis with zeros: with h = c = 0 a zero x_proj step is
    # a no-op (g pre-activation 0 -> tanh 0 -> c stays 0 -> h stays 0), so
    # leading padded steps do not change the result.
    x_proj = jnp.pad(x_proj, ((Tp - T, 0), (0, Bp - B), (0, 0)))
    x_proj = x_proj.astype(xproj_dtype)                             # (Tp,Bp,4H)

    whh_t = w_hh.T                                                  # (H, 4H)
    wfc_pad = jnp.zeros((H, Op), jnp.float32).at[:, :O].set(
        params["w_fc"].T.astype(jnp.float32))                       # (H, Op)
    bfc_pad = jnp.full((1, Op), -1e30, jnp.float32).at[0, :O].set(
        params["b_fc"].astype(jnp.float32))                         # (1, Op)

    # VMEM limit sized to the double-buffered time chunk + small operands.
    itemsize = jnp.dtype(xproj_dtype).itemsize
    chunk_bytes = Tc * BB * 4 * H * itemsize
    small_bytes = 4 * (H * 4 * H + H * Op + Op + BB * Op + 2 * BB * H)
    vmem_limit = int(max(16 * 1024 * 1024,
                         2 * chunk_bytes + 2 * small_bytes + (4 << 20)))

    grid = (Bp // BB, Tp // Tc)   # (batch blocks [parallel], time chunks [arbitrary])

    out_pad = pl.pallas_call(
        _lstm_kernel,
        out_shape=jax.ShapeDtypeStruct((Bp, Op), jnp.float32),
        grid_spec=pltpu.PrefetchScalarGridSpec(
            num_scalar_prefetch=0,
            grid=grid,
            in_specs=[
                pl.BlockSpec((Tc, BB, 4 * H), lambda b, t: (t, b, 0)),  # x_proj
                pl.BlockSpec((H, 4 * H), lambda b, t: (0, 0)),          # W_hh^T
                pl.BlockSpec((H, Op), lambda b, t: (0, 0)),             # W_fc^T
                pl.BlockSpec((1, Op), lambda b, t: (0, 0)),             # b_fc
            ],
            out_specs=pl.BlockSpec((BB, Op), lambda b, t: (b, 0)),
            scratch_shapes=[
                pltpu.VMEM((BB, H), jnp.float32),   # h (persists across chunks)
                pltpu.VMEM((BB, H), jnp.float32),   # c (persists across chunks)
            ],
        ),
        compiler_params=pltpu.CompilerParams(
            dimension_semantics=("parallel", "arbitrary"),
            vmem_limit_bytes=vmem_limit,
        ),
    )(x_proj, whh_t, wfc_pad, bfc_pad)

    return out_pad[:B, :O]


def init_params(key, input_size, hidden_size, output_size):
    """Deterministic parameter init mimicking PyTorch defaults."""
    ks = jax.random.split(key, 7)
    k_lstm = 1.0 / jnp.sqrt(hidden_size)
    k_fc = 1.0 / jnp.sqrt(hidden_size)
    u = lambda k, shape, bound: jax.random.uniform(
        k, shape, jnp.float32, -bound, bound)
    return {
        # nn.Embedding default: N(0, 1)
        "embedding": jax.random.normal(
            ks[0], (input_size, hidden_size), jnp.float32),
        # nn.LSTM default: U(-1/sqrt(H), 1/sqrt(H)), gate order i,f,g,o
        "w_ih": u(ks[1], (4 * hidden_size, hidden_size), k_lstm),
        "w_hh": u(ks[2], (4 * hidden_size, hidden_size), k_lstm),
        "b_ih": u(ks[3], (4 * hidden_size,), k_lstm),
        "b_hh": u(ks[4], (4 * hidden_size,), k_lstm),
        # nn.Linear default: U(-1/sqrt(in), 1/sqrt(in))
        "w_fc": u(ks[5], (output_size, hidden_size), k_fc),
        "b_fc": u(ks[6], (output_size,), k_fc),
    }


def _reference_forward(tokens, params):
    """Pure-JAX reference for sanity checking."""
    emb = params["embedding"][tokens].astype(jnp.float32)   # (B, T, H)
    B, T, H = emb.shape
    h = jnp.zeros((B, H), jnp.float32)
    c = jnp.zeros((B, H), jnp.float32)
    for t in range(T):
        gates = (emb[:, t, :] @ params["w_ih"].T + params["b_ih"]
                 + h @ params["w_hh"].T + params["b_hh"])
        i = jax.nn.sigmoid(gates[:, 0:H])
        f = jax.nn.sigmoid(gates[:, H:2 * H])
        g = jnp.tanh(gates[:, 2 * H:3 * H])
        o = jax.nn.sigmoid(gates[:, 3 * H:4 * H])
        c = f * c + i * g
        h = o * jnp.tanh(c)
    logits = h @ params["w_fc"].T + params["b_fc"]
    return jax.nn.log_softmax(logits, axis=1)


if __name__ == "__main__":
    INPUT_SIZE = 30      # vocab
    HIDDEN_SIZE = 32
    OUTPUT_SIZE = 8
    BATCH = 2
    SEQ = 8

    key = jax.random.PRNGKey(0)
    pkey, tkey = jax.random.split(key)
    params = init_params(pkey, INPUT_SIZE, HIDDEN_SIZE, OUTPUT_SIZE)
    tokens = jax.random.randint(tkey, (BATCH, SEQ), 0, INPUT_SIZE, jnp.int32)

    ref = _reference_forward(tokens, params)

    # f32-streamed x_proj: bit-faithful path, tight tolerance.
    out = lstm_forward(tokens, params, xproj_dtype=jnp.float32, time_chunk=256)
    jax.block_until_ready(out)
    assert out.shape == (BATCH, OUTPUT_SIZE)
    assert jnp.allclose(out, ref, atol=1e-4, rtol=1e-4), (
        f"f32 mismatch: max err {jnp.max(jnp.abs(out - ref))}")

    # bf16-streamed x_proj: halves the only large HBM->VMEM DMA; gate math and
    # MXU accumulation stay f32, so only the input projection is quantized.
    out_bf16 = lstm_forward(tokens, params, xproj_dtype=jnp.bfloat16,
                            time_chunk=256)
    jax.block_until_ready(out_bf16)
    assert jnp.allclose(out_bf16, ref, atol=2e-1), (
        f"bf16 mismatch: max err {jnp.max(jnp.abs(out_bf16 - ref))}")

    print("KERNEL_OK")
</pallas_src>

<mosaic_0001>
module attributes {stable_mosaic.version = 11 : i64} {
  func.func @_lstm_kernel(%arg0: i32, %arg1: i32, %arg2: memref<8x8x128xf32, #tpu.memory_space<vmem>>, %arg3: memref<32x128xf32, #tpu.memory_space<vmem>>, %arg4: memref<32x128xf32, #tpu.memory_space<vmem>>, %arg5: memref<1x128xf32, #tpu.memory_space<vmem>>, %arg6: memref<8x128xf32, #tpu.memory_space<vmem>>, %arg7: memref<8x32xf32, #tpu.memory_space<vmem>>, %arg8: memref<8x32xf32, #tpu.memory_space<vmem>>) attributes {dimension_semantics = [#tpu.dimension_semantics<parallel>, #tpu.dimension_semantics<arbitrary>], iteration_bounds = array<i64: 1, 1>, scalar_prefetch = 0 : i64, scratch_operands = 2 : i64, tpu.core_type = #tpu.core_type<tc>, window_params = [{transform_indices = @transform_0, window_bounds = array<i64: 8, 8, 128>}, {pipeline_mode = #tpu.pipeline_mode<synchronous>, transform_indices = @transform_1, window_bounds = array<i64: 32, 128>}, {pipeline_mode = #tpu.pipeline_mode<synchronous>, transform_indices = @transform_2, window_bounds = array<i64: 32, 128>}, {pipeline_mode = #tpu.pipeline_mode<synchronous>, transform_indices = @transform_3, window_bounds = array<i64: 1, 128>}, {transform_indices = @transform_4, window_bounds = array<i64: 8, 128>}]} {
    %c0_i32 = arith.constant 0 : i32
    %0 = arith.cmpi eq, %arg1, %c0_i32 : i32
    %1 = arith.extui %0 : i1 to i32
    %c0_i32_0 = arith.constant 0 : i32
    %2 = arith.cmpi ne, %1, %c0_i32_0 : i32
    scf.if %2 {
      %cst_60 = arith.constant 0.000000e+00 : f32
      %195 = vector.broadcast %cst_60 : f32 to vector<8x32xf32>
      %c0_61 = arith.constant 0 : index
      %c0_62 = arith.constant 0 : index
      %196 = vector.load %arg7[%c0_61, %c0_62] : memref<8x32xf32, #tpu.memory_space<vmem>>, vector<8x32xf32>
      tpu.vector_store %arg7[%c0_61, %c0_62], %195 {strides = array<i32>} : memref<8x32xf32, #tpu.memory_space<vmem>>, vector<8x32xf32>,
      %cst_63 = arith.constant 0.000000e+00 : f32
      %197 = vector.broadcast %cst_63 : f32 to vector<8x32xf32>
      %c0_64 = arith.constant 0 : index
      %c0_65 = arith.constant 0 : index
      %198 = vector.load %arg8[%c0_64, %c0_65] : memref<8x32xf32, #tpu.memory_space<vmem>>, vector<8x32xf32>
      tpu.vector_store %arg8[%c0_64, %c0_65], %197 {strides = array<i32>} : memref<8x32xf32, #tpu.memory_space<vmem>>, vector<8x32xf32>,
    } else {
    }
    %c0 = arith.constant 0 : index
    %c0_1 = arith.constant 0 : index
    %3 = vector.load %arg3[%c0, %c0_1] : memref<32x128xf32, #tpu.memory_space<vmem>>, vector<32x128xf32>
    %c0_2 = arith.constant 0 : index
    %c0_3 = arith.constant 0 : index
    %4 = vector.load %arg7[%c0_2, %c0_3] : memref<8x32xf32, #tpu.memory_space<vmem>>, vector<8x32xf32>
    %c0_4 = arith.constant 0 : index
    %c0_5 = arith.constant 0 : index
    %5 = vector.load %arg8[%c0_4, %c0_5] : memref<8x32xf32, #tpu.memory_space<vmem>>, vector<8x32xf32>
    %c0_i32_6 = arith.constant 0 : i32
    %6 = arith.index_cast %c0_i32_6 : i32 to index
    %c0_7 = arith.constant 0 : index
    %c0_8 = arith.constant 0 : index
    %7 = vector.load %arg2[%6, %c0_7, %c0_8] : memref<8x8x128xf32, #tpu.memory_space<vmem>>, vector<1x8x128xf32>
    %8 = vector.shape_cast %7 : vector<1x8x128xf32> to vector<8x128xf32>
    %cst = arith.constant dense<0.000000e+00> : vector<8x128xf32>
    %9 = tpu.matmul %4, %3, %cst {dimension_numbers = #tpu.dot_dimension_numbers<[1], [0], [0], [1], [0, 0, 1, 1], [], []>} : vector<8x32xf32>, vector<32x128xf32>, vector<8x128xf32> -> vector<8x128xf32>
    %10 = arith.addf %8, %9 : vector<8x128xf32>
    %11 = arith.negf %10 : vector<8x128xf32>
    %12 = math.exp %11 : vector<8x128xf32>
    %cst_9 = arith.constant 1.000000e+00 : f32
    %13 = vector.broadcast %cst_9 : f32 to vector<8x128xf32>
    %14 = arith.addf %13, %12 : vector<8x128xf32>
    %15 = arith.divf %13, %14 : vector<8x128xf32>
    %16 = vector.extract_strided_slice %15 {offsets = [0, 0], sizes = [8, 32], strides = [1, 1]} : vector<8x128xf32> to vector<8x32xf32>
    %17 = vector.extract_strided_slice %15 {offsets = [0, 32], sizes = [8, 32], strides = [1, 1]} : vector<8x128xf32> to vector<8x32xf32>
    %18 = vector.extract_strided_slice %15 {offsets = [0, 64], sizes = [8, 32], strides = [1, 1]} : vector<8x128xf32> to vector<8x32xf32>
    %cst_10 = arith.constant 2.000000e+00 : f32
    %19 = vector.broadcast %cst_10 : f32 to vector<8x32xf32>
    %20 = arith.mulf %19, %18 : vector<8x32xf32>
    %cst_11 = arith.constant 1.000000e+00 : f32
    %21 = vector.broadcast %cst_11 : f32 to vector<8x32xf32>
    %22 = arith.subf %20, %21 : vector<8x32xf32>
    %23 = vector.extract_strided_slice %15 {offsets = [0, 96], sizes = [8, 32], strides = [1, 1]} : vector<8x128xf32> to vector<8x32xf32>
    %24 = arith.mulf %17, %5 : vector<8x32xf32>
    %25 = arith.mulf %16, %22 : vector<8x32xf32>
    %26 = arith.addf %24, %25 : vector<8x32xf32>
    %27 = math.tanh %26 : vector<8x32xf32>
    %28 = arith.mulf %23, %27 : vector<8x32xf32>
    %c1_i32 = arith.constant 1 : i32
    %29 = arith.index_cast %c1_i32 : i32 to index
    %c0_12 = arith.constant 0 : index
    %c0_13 = arith.constant 0 : index
    %30 = vector.load %arg2[%29, %c0_12, %c0_13] : memref<8x8x128xf32, #tpu.memory_space<vmem>>, vector<1x8x128xf32>
    %31 = vector.shape_cast %30 : vector<1x8x128xf32> to vector<8x128xf32>
    %cst_14 = arith.constant dense<0.000000e+00> : vector<8x128xf32>
    %32 = tpu.matmul %28, %3, %cst_14 {dimension_numbers = #tpu.dot_dimension_numbers<[1], [0], [0], [1], [0, 0, 1, 1], [], []>} : vector<8x32xf32>, vector<32x128xf32>, vector<8x128xf32> -> vector<8x128xf32>
    %33 = arith.addf %31, %32 : vector<8x128xf32>
    %34 = arith.negf %33 : vector<8x128xf32>
    %35 = math.exp %34 : vector<8x128xf32>
    %cst_15 = arith.constant 1.000000e+00 : f32
    %36 = vector.broadcast %cst_15 : f32 to vector<8x128xf32>
    %37 = arith.addf %36, %35 : vector<8x128xf32>
    %38 = arith.divf %36, %37 : vector<8x128xf32>
    %39 = vector.extract_strided_slice %38 {offsets = [0, 0], sizes = [8, 32], strides = [1, 1]} : vector<8x128xf32> to vector<8x32xf32>
    %40 = vector.extract_strided_slice %38 {offsets = [0, 32], sizes = [8, 32], strides = [1, 1]} : vector<8x128xf32> to vector<8x32xf32>
    %41 = vector.extract_strided_slice %38 {offsets = [0, 64], sizes = [8, 32], strides = [1, 1]} : vector<8x128xf32> to vector<8x32xf32>
    %cst_16 = arith.constant 2.000000e+00 : f32
    %42 = vector.broadcast %cst_16 : f32 to vector<8x32xf32>
    %43 = arith.mulf %42, %41 : vector<8x32xf32>
    %cst_17 = arith.constant 1.000000e+00 : f32
    %44 = vector.broadcast %cst_17 : f32 to vector<8x32xf32>
    %45 = arith.subf %43, %44 : vector<8x32xf32>
    %46 = vector.extract_strided_slice %38 {offsets = [0, 96], sizes = [8, 32], strides = [1, 1]} : vector<8x128xf32> to vector<8x32xf32>
    %47 = arith.mulf %40, %26 : vector<8x32xf32>
    %48 = arith.mulf %39, %45 : vector<8x32xf32>
    %49 = arith.addf %47, %48 : vector<8x32xf32>
    %50 = math.tanh %49 : vector<8x32xf32>
    %51 = arith.mulf %46, %50 : vector<8x32xf32>
    %c2_i32 = arith.constant 2 : i32
    %52 = arith.index_cast %c2_i32 : i32 to index
    %c0_18 = arith.constant 0 : index
    %c0_19 = arith.constant 0 : index
    %53 = vector.load %arg2[%52, %c0_18, %c0_19] : memref<8x8x128xf32, #tpu.memory_space<vmem>>, vector<1x8x128xf32>
    %54 = vector.shape_cast %53 : vector<1x8x128xf32> to vector<8x128xf32>
    %cst_20 = arith.constant dense<0.000000e+00> : vector<8x128xf32>
    %55 = tpu.matmul %51, %3, %cst_20 {dimension_numbers = #tpu.dot_dimension_numbers<[1], [0], [0], [1], [0, 0, 1, 1], [], []>} : vector<8x32xf32>, vector<32x128xf32>, vector<8x128xf32> -> vector<8x128xf32>
    %56 = arith.addf %54, %55 : vector<8x128xf32>
    %57 = arith.negf %56 : vector<8x128xf32>
    %58 = math.exp %57 : vector<8x128xf32>
    %cst_21 = arith.constant 1.000000e+00 : f32
    %59 = vector.broadcast %cst_21 : f32 to vector<8x128xf32>
    %60 = arith.addf %59, %58 : vector<8x128xf32>
    %61 = arith.divf %59, %60 : vector<8x128xf32>
    %62 = vector.extract_strided_slice %61 {offsets = [0, 0], sizes = [8, 32], strides = [1, 1]} : vector<8x128xf32> to vector<8x32xf32>
    %63 = vector.extract_strided_slice %61 {offsets = [0, 32], sizes = [8, 32], strides = [1, 1]} : vector<8x128xf32> to vector<8x32xf32>
    %64 = vector.extract_strided_slice %61 {offsets = [0, 64], sizes = [8, 32], strides = [1, 1]} : vector<8x128xf32> to vector<8x32xf32>
    %cst_22 = arith.constant 2.000000e+00 : f32
    %65 = vector.broadcast %cst_22 : f32 to vector<8x32xf32>
    %66 = arith.mulf %65, %64 : vector<8x32xf32>
    %cst_23 = arith.constant 1.000000e+00 : f32
    %67 = vector.broadcast %cst_23 : f32 to vector<8x32xf32>
    %68 = arith.subf %66, %67 : vector<8x32xf32>
    %69 = vector.extract_strided_slice %61 {offsets = [0, 96], sizes = [8, 32], strides = [1, 1]} : vector<8x128xf32> to vector<8x32xf32>
    %70 = arith.mulf %63, %49 : vector<8x32xf32>
    %71 = arith.mulf %62, %68 : vector<8x32xf32>
    %72 = arith.addf %70, %71 : vector<8x32xf32>
    %73 = math.tanh %72 : vector<8x32xf32>
    %74 = arith.mulf %69, %73 : vector<8x32xf32>
    %c3_i32 = arith.constant 3 : i32
    %75 = arith.index_cast %c3_i32 : i32 to index
    %c0_24 = arith.constant 0 : index
    %c0_25 = arith.constant 0 : index
    %76 = vector.load %arg2[%75, %c0_24, %c0_25] : memref<8x8x128xf32, #tpu.memory_space<vmem>>, vector<1x8x128xf32>
    %77 = vector.shape_cast %76 : vector<1x8x128xf32> to vector<8x128xf32>
    %cst_26 = arith.constant dense<0.000000e+00> : vector<8x128xf32>
    %78 = tpu.matmul %74, %3, %cst_26 {dimension_numbers = #tpu.dot_dimension_numbers<[1], [0], [0], [1], [0, 0, 1, 1], [], []>} : vector<8x32xf32>, vector<32x128xf32>, vector<8x128xf32> -> vector<8x128xf32>
    %79 = arith.addf %77, %78 : vector<8x128xf32>
    %80 = arith.negf %79 : vector<8x128xf32>
    %81 = math.exp %80 : vector<8x128xf32>
    %cst_27 = arith.constant 1.000000e+00 : f32
    %82 = vector.broadcast %cst_27 : f32 to vector<8x128xf32>
    %83 = arith.addf %82, %81 : vector<8x128xf32>
    %84 = arith.divf %82, %83 : vector<8x128xf32>
    %85 = vector.extract_strided_slice %84 {offsets = [0, 0], sizes = [8, 32], strides = [1, 1]} : vector<8x128xf32> to vector<8x32xf32>
    %86 = vector.extract_strided_slice %84 {offsets = [0, 32], sizes = [8, 32], strides = [1, 1]} : vector<8x128xf32> to vector<8x32xf32>
    %87 = vector.extract_strided_slice %84 {offsets = [0, 64], sizes = [8, 32], strides = [1, 1]} : vector<8x128xf32> to vector<8x32xf32>
    %cst_28 = arith.constant 2.000000e+00 : f32
    %88 = vector.broadcast %cst_28 : f32 to vector<8x32xf32>
    %89 = arith.mulf %88, %87 : vector<8x32xf32>
    %cst_29 = arith.constant 1.000000e+00 : f32
    %90 = vector.broadcast %cst_29 : f32 to vector<8x32xf32>
    %91 = arith.subf %89, %90 : vector<8x32xf32>
    %92 = vector.extract_strided_slice %84 {offsets = [0, 96], sizes = [8, 32], strides = [1, 1]} : vector<8x128xf32> to vector<8x32xf32>
    %93 = arith.mulf %86, %72 : vector<8x32xf32>
    %94 = arith.mulf %85, %91 : vector<8x32xf32>
    %95 = arith.addf %93, %94 : vector<8x32xf32>
    %96 = math.tanh %95 : vector<8x32xf32>
    %97 = arith.mulf %92, %96 : vector<8x32xf32>
    %c4_i32 = arith.constant 4 : i32
    %98 = arith.index_cast %c4_i32 : i32 to index
    %c0_30 = arith.constant 0 : index
    %c0_31 = arith.constant 0 : index
    %99 = vector.load %arg2[%98, %c0_30, %c0_31] : memref<8x8x128xf32, #tpu.memory_space<vmem>>, vector<1x8x128xf32>
    %100 = vector.shape_cast %99 : vector<1x8x128xf32> to vector<8x128xf32>
    %cst_32 = arith.constant dense<0.000000e+00> : vector<8x128xf32>
    %101 = tpu.matmul %97, %3, %cst_32 {dimension_numbers = #tpu.dot_dimension_numbers<[1], [0], [0], [1], [0, 0, 1, 1], [], []>} : vector<8x32xf32>, vector<32x128xf32>, vector<8x128xf32> -> vector<8x128xf32>
    %102 = arith.addf %100, %101 : vector<8x128xf32>
    %103 = arith.negf %102 : vector<8x128xf32>
    %104 = math.exp %103 : vector<8x128xf32>
    %cst_33 = arith.constant 1.000000e+00 : f32
    %105 = vector.broadcast %cst_33 : f32 to vector<8x128xf32>
    %106 = arith.addf %105, %104 : vector<8x128xf32>
    %107 = arith.divf %105, %106 : vector<8x128xf32>
    %108 = vector.extract_strided_slice %107 {offsets = [0, 0], sizes = [8, 32], strides = [1, 1]} : vector<8x128xf32> to vector<8x32xf32>
    %109 = vector.extract_strided_slice %107 {offsets = [0, 32], sizes = [8, 32], strides = [1, 1]} : vector<8x128xf32> to vector<8x32xf32>
    %110 = vector.extract_strided_slice %107 {offsets = [0, 64], sizes = [8, 32], strides = [1, 1]} : vector<8x128xf32> to vector<8x32xf32>
    %cst_34 = arith.constant 2.000000e+00 : f32
    %111 = vector.broadcast %cst_34 : f32 to vector<8x32xf32>
    %112 = arith.mulf %111, %110 : vector<8x32xf32>
    %cst_35 = arith.constant 1.000000e+00 : f32
    %113 = vector.broadcast %cst_35 : f32 to vector<8x32xf32>
    %114 = arith.subf %112, %113 : vector<8x32xf32>
    %115 = vector.extract_strided_slice %107 {offsets = [0, 96], sizes = [8, 32], strides = [1, 1]} : vector<8x128xf32> to vector<8x32xf32>
    %116 = arith.mulf %109, %95 : vector<8x32xf32>
    %117 = arith.mulf %108, %114 : vector<8x32xf32>
    %118 = arith.addf %116, %117 : vector<8x32xf32>
    %119 = math.tanh %118 : vector<8x32xf32>
    %120 = arith.mulf %115, %119 : vector<8x32xf32>
    %c5_i32 = arith.constant 5 : i32
    %121 = arith.index_cast %c5_i32 : i32 to index
    %c0_36 = arith.constant 0 : index
    %c0_37 = arith.constant 0 : index
    %122 = vector.load %arg2[%121, %c0_36, %c0_37] : memref<8x8x128xf32, #tpu.memory_space<vmem>>, vector<1x8x128xf32>
    %123 = vector.shape_cast %122 : vector<1x8x128xf32> to vector<8x128xf32>
    %cst_38 = arith.constant dense<0.000000e+00> : vector<8x128xf32>
    %124 = tpu.matmul %120, %3, %cst_38 {dimension_numbers = #tpu.dot_dimension_numbers<[1], [0], [0], [1], [0, 0, 1, 1], [], []>} : vector<8x32xf32>, vector<32x128xf32>, vector<8x128xf32> -> vector<8x128xf32>
    %125 = arith.addf %123, %124 : vector<8x128xf32>
    %126 = arith.negf %125 : vector<8x128xf32>
    %127 = math.exp %126 : vector<8x128xf32>
    %cst_39 = arith.constant 1.000000e+00 : f32
    %128 = vector.broadcast %cst_39 : f32 to vector<8x128xf32>
    %129 = arith.addf %128, %127 : vector<8x128xf32>
    %130 = arith.divf %128, %129 : vector<8x128xf32>
    %131 = vector.extract_strided_slice %130 {offsets = [0, 0], sizes = [8, 32], strides = [1, 1]} : vector<8x128xf32> to vector<8x32xf32>
    %132 = vector.extract_strided_slice %130 {offsets = [0, 32], sizes = [8, 32], strides = [1, 1]} : vector<8x128xf32> to vector<8x32xf32>
    %133 = vector.extract_strided_slice %130 {offsets = [0, 64], sizes = [8, 32], strides = [1, 1]} : vector<8x128xf32> to vector<8x32xf32>
    %cst_40 = arith.constant 2.000000e+00 : f32
    %134 = vector.broadcast %cst_40 : f32 to vector<8x32xf32>
    %135 = arith.mulf %134, %133 : vector<8x32xf32>
    %cst_41 = arith.constant 1.000000e+00 : f32
    %136 = vector.broadcast %cst_41 : f32 to vector<8x32xf32>
    %137 = arith.subf %135, %136 : vector<8x32xf32>
    %138 = vector.extract_strided_slice %130 {offsets = [0, 96], sizes = [8, 32], strides = [1, 1]} : vector<8x128xf32> to vector<8x32xf32>
    %139 = arith.mulf %132, %118 : vector<8x32xf32>
    %140 = arith.mulf %131, %137 : vector<8x32xf32>
    %141 = arith.addf %139, %140 : vector<8x32xf32>
    %142 = math.tanh %141 : vector<8x32xf32>
    %143 = arith.mulf %138, %142 : vector<8x32xf32>
    %c6_i32 = arith.constant 6 : i32
    %144 = arith.index_cast %c6_i32 : i32 to index
    %c0_42 = arith.constant 0 : index
    %c0_43 = arith.constant 0 : index
    %145 = vector.load %arg2[%144, %c0_42, %c0_43] : memref<8x8x128xf32, #tpu.memory_space<vmem>>, vector<1x8x128xf32>
    %146 = vector.shape_cast %145 : vector<1x8x128xf32> to vector<8x128xf32>
    %cst_44 = arith.constant dense<0.000000e+00> : vector<8x128xf32>
    %147 = tpu.matmul %143, %3, %cst_44 {dimension_numbers = #tpu.dot_dimension_numbers<[1], [0], [0], [1], [0, 0, 1, 1], [], []>} : vector<8x32xf32>, vector<32x128xf32>, vector<8x128xf32> -> vector<8x128xf32>
    %148 = arith.addf %146, %147 : vector<8x128xf32>
    %149 = arith.negf %148 : vector<8x128xf32>
    %150 = math.exp %149 : vector<8x128xf32>
    %cst_45 = arith.constant 1.000000e+00 : f32
    %151 = vector.broadcast %cst_45 : f32 to vector<8x128xf32>
    %152 = arith.addf %151, %150 : vector<8x128xf32>
    %153 = arith.divf %151, %152 : vector<8x128xf32>
    %154 = vector.extract_strided_slice %153 {offsets = [0, 0], sizes = [8, 32], strides = [1, 1]} : vector<8x128xf32> to vector<8x32xf32>
    %155 = vector.extract_strided_slice %153 {offsets = [0, 32], sizes = [8, 32], strides = [1, 1]} : vector<8x128xf32> to vector<8x32xf32>
    %156 = vector.extract_strided_slice %153 {offsets = [0, 64], sizes = [8, 32], strides = [1, 1]} : vector<8x128xf32> to vector<8x32xf32>
    %cst_46 = arith.constant 2.000000e+00 : f32
    %157 = vector.broadcast %cst_46 : f32 to vector<8x32xf32>
    %158 = arith.mulf %157, %156 : vector<8x32xf32>
    %cst_47 = arith.constant 1.000000e+00 : f32
    %159 = vector.broadcast %cst_47 : f32 to vector<8x32xf32>
    %160 = arith.subf %158, %159 : vector<8x32xf32>
    %161 = vector.extract_strided_slice %153 {offsets = [0, 96], sizes = [8, 32], strides = [1, 1]} : vector<8x128xf32> to vector<8x32xf32>
    %162 = arith.mulf %155, %141 : vector<8x32xf32>
    %163 = arith.mulf %154, %160 : vector<8x32xf32>
    %164 = arith.addf %162, %163 : vector<8x32xf32>
    %165 = math.tanh %164 : vector<8x32xf32>
    %166 = arith.mulf %161, %165 : vector<8x32xf32>
    %c7_i32 = arith.constant 7 : i32
    %167 = arith.index_cast %c7_i32 : i32 to index
    %c0_48 = arith.constant 0 : index
    %c0_49 = arith.constant 0 : index
    %168 = vector.load %arg2[%167, %c0_48, %c0_49] : memref<8x8x128xf32, #tpu.memory_space<vmem>>, vector<1x8x128xf32>
    %169 = vector.shape_cast %168 : vector<1x8x128xf32> to vector<8x128xf32>
    %cst_50 = arith.constant dense<0.000000e+00> : vector<8x128xf32>
    %170 = tpu.matmul %166, %3, %cst_50 {dimension_numbers = #tpu.dot_dimension_numbers<[1], [0], [0], [1], [0, 0, 1, 1], [], []>} : vector<8x32xf32>, vector<32x128xf32>, vector<8x128xf32> -> vector<8x128xf32>
    %171 = arith.addf %169, %170 : vector<8x128xf32>
    %172 = arith.negf %171 : vector<8x128xf32>
    %173 = math.exp %172 : vector<8x128xf32>
    %cst_51 = arith.constant 1.000000e+00 : f32
    %174 = vector.broadcast %cst_51 : f32 to vector<8x128xf32>
    %175 = arith.addf %174, %173 : vector<8x128xf32>
    %176 = arith.divf %174, %175 : vector<8x128xf32>
    %177 = vector.extract_strided_slice %176 {offsets = [0, 0], sizes = [8, 32], strides = [1, 1]} : vector<8x128xf32> to vector<8x32xf32>
    %178 = vector.extract_strided_slice %176 {offsets = [0, 32], sizes = [8, 32], strides = [1, 1]} : vector<8x128xf32> to vector<8x32xf32>
    %179 = vector.extract_strided_slice %176 {offsets = [0, 64], sizes = [8, 32], strides = [1, 1]} : vector<8x128xf32> to vector<8x32xf32>
    %cst_52 = arith.constant 2.000000e+00 : f32
    %180 = vector.broadcast %cst_52 : f32 to vector<8x32xf32>
    %181 = arith.mulf %180, %179 : vector<8x32xf32>
    %cst_53 = arith.constant 1.000000e+00 : f32
    %182 = vector.broadcast %cst_53 : f32 to vector<8x32xf32>
    %183 = arith.subf %181, %182 : vector<8x32xf32>
    %184 = vector.extract_strided_slice %176 {offsets = [0, 96], sizes = [8, 32], strides = [1, 1]} : vector<8x128xf32> to vector<8x32xf32>
    %185 = arith.mulf %178, %164 : vector<8x32xf32>
    %186 = arith.mulf %177, %183 : vector<8x32xf32>
    %187 = arith.addf %185, %186 : vector<8x32xf32>
    %188 = math.tanh %187 : vector<8x32xf32>
    %189 = arith.mulf %184, %188 : vector<8x32xf32>
    %c8_i32 = arith.constant 8 : i32
    %c0_54 = arith.constant 0 : index
    %c0_55 = arith.constant 0 : index
    %190 = vector.load %arg7[%c0_54, %c0_55] : memref<8x32xf32, #tpu.memory_space<vmem>>, vector<8x32xf32>
    tpu.vector_store %arg7[%c0_54, %c0_55], %189 {strides = array<i32>} : memref<8x32xf32, #tpu.memory_space<vmem>>, vector<8x32xf32>,
    %c0_56 = arith.constant 0 : index
    %c0_57 = arith.constant 0 : index
    %191 = vector.load %arg8[%c0_56, %c0_57] : memref<8x32xf32, #tpu.memory_space<vmem>>, vector<8x32xf32>
    tpu.vector_store %arg8[%c0_56, %c0_57], %187 {strides = array<i32>} : memref<8x32xf32, #tpu.memory_space<vmem>>, vector<8x32xf32>,
    %c0_i32_58 = arith.constant 0 : i32
    %192 = arith.cmpi eq, %arg1, %c0_i32_58 : i32
    %193 = arith.extui %192 : i1 to i32
    %c0_i32_59 = arith.constant 0 : i32
    %194 = arith.cmpi ne, %193, %c0_i32_59 : i32
    scf.if %194 {
      %c0_60 = arith.constant 0 : index
      %c0_61 = arith.constant 0 : index
      %195 = vector.load %arg4[%c0_60, %c0_61] : memref<32x128xf32, #tpu.memory_space<vmem>>, vector<32x128xf32>
      %cst_62 = arith.constant dense<0.000000e+00> : vector<8x128xf32>
      %196 = tpu.matmul %189, %195, %cst_62 {dimension_numbers = #tpu.dot_dimension_numbers<[1], [0], [0], [1], [0, 0, 1, 1], [], []>} : vector<8x32xf32>, vector<32x128xf32>, vector<8x128xf32> -> vector<8x128xf32>
      %c0_63 = arith.constant 0 : index
      %c0_64 = arith.constant 0 : index
      %197 = vector.load %arg5[%c0_63, %c0_64] : memref<1x128xf32, #tpu.memory_space<vmem>>, vector<1x128xf32>
      %198 = vector.broadcast %197 : vector<1x128xf32> to vector<8x128xf32>
      %199 = arith.addf %196, %198 : vector<8x128xf32>
      %cst_65 = arith.constant dense<0xFF800000> : vector<8xf32>
      %200 = vector.multi_reduction <maximumf>, %199, %cst_65 [1] : vector<8x128xf32> to vector<8xf32>
      %201 = vector.shape_cast %200 : vector<8xf32> to vector<8x1xf32>
      %202 = vector.broadcast %201 : vector<8x1xf32> to vector<8x128xf32>
      %203 = arith.subf %199, %202 : vector<8x128xf32>
      %204 = math.exp %203 : vector<8x128xf32>
      %cst_66 = arith.constant dense<0.000000e+00> : vector<8xf32>
      %205 = vector.multi_reduction <add>, %204, %cst_66 [1] : vector<8x128xf32> to vector<8xf32>
      %206 = vector.shape_cast %205 : vector<8xf32> to vector<8x1xf32>
      %207 = math.log %206 : vector<8x1xf32>
      %208 = arith.addf %207, %201 : vector<8x1xf32>
      %209 = vector.broadcast %208 : vector<8x1xf32> to vector<8x128xf32>
      %210 = arith.subf %199, %209 : vector<8x128xf32>
      %c0_67 = arith.constant 0 : index
      %c0_68 = arith.constant 0 : index
      %211 = vector.load %arg6[%c0_67, %c0_68] : memref<8x128xf32, #tpu.memory_space<vmem>>, vector<8x128xf32>
      tpu.vector_store %arg6[%c0_67, %c0_68], %210 {strides = array<i32>} : memref<8x128xf32, #tpu.memory_space<vmem>>, vector<8x128xf32>,
    } else {
    }
    return
  }
  func.func @transform_0(%arg0: i32, %arg1: i32) -> (i32, i32, i32) {
    %c0_i32 = arith.constant 0 : i32
    %c0_i32_0 = arith.constant 0 : i32
    return %arg1, %arg0, %c0_i32 : i32, i32, i32
  }
  func.func @transform_1(%arg0: i32, %arg1: i32) -> (i32, i32) {
    %c0_i32 = arith.constant 0 : i32
    %c0_i32_0 = arith.constant 0 : i32
    %c0_i32_1 = arith.constant 0 : i32
    return %c0_i32, %c0_i32_0 : i32, i32
  }
  func.func @transform_2(%arg0: i32, %arg1: i32) -> (i32, i32) {
    %c0_i32 = arith.constant 0 : i32
    %c0_i32_0 = arith.constant 0 : i32
    %c0_i32_1 = arith.constant 0 : i32
    return %c0_i32, %c0_i32_0 : i32, i32
  }
  func.func @transform_3(%arg0: i32, %arg1: i32) -> (i32, i32) {
    %c0_i32 = arith.constant 0 : i32
    %c0_i32_0 = arith.constant 0 : i32
    %c0_i32_1 = arith.constant 0 : i32
    return %c0_i32, %c0_i32_0 : i32, i32
  }
  func.func @transform_4(%arg0: i32, %arg1: i32) -> (i32, i32) {
    %c0_i32 = arith.constant 0 : i32
    %c0_i32_0 = arith.constant 0 : i32
    return %arg0, %c0_i32 : i32, i32
  }
}

</mosaic_0001>

<bundles_post_ra>
// kernel: lstm_forward.1
= control target key start
LH: loop header
LB: loop body
LE: loop exit
PB: predicated region body
PF: predicated region fallthrough
CT: control target
= control target key end

     0   :  { %vm21_vm0 = vcmask 261120   ;;  %v1257_v0 = vmov 0.0|0.0   ;;  %vm1258_vm1 = vmmov 0   ;;  %v1259_v4 = vmov 0.0   ;;  %s1260_s24 = smov 64   ;;  %s1261_s25 = smov 32   ;;  %s1446_s1 = inlined_call_operand.vmem [shape: f32[32,128], index: 1, kind: input, shape index: {}]   ;;  %s1447_s0 = inlined_call_operand.vmem [shape: f32[8,8,128], index: 0, kind: input, shape index: {}]   ;;  %s1448_s2 = inlined_call_operand.vmem [shape: f32[32,128], index: 2, kind: input, shape index: {}]   ;;  %s1449_s3 = inlined_call_operand.vmem [shape: f32[1,128], index: 3, kind: input, shape index: {}]   ;;  %s1450_s4 = inlined_call_operand.vmem [shape: f32[8,128], index: 4, kind: output, shape index: {}]  }
   0x1   :  { %1145 = vmatprep.subr.bf16.mxu0 %v1257_v0  ;;  %v24_v1 = vld [vmem:[%s1446_s1] sm:$0xff]  ;;  %v25_v2 = vld [vmem:[%s1446_s1 + $0x8] sm:$0xff]  ;;  %v26_v3 = vld [vmem:[%s1446_s1 + $0x10] sm:$0xff]  ;;  %1054 = vmatprep.mubr.msk.f32.mxu0 %vm1258_vm1, %v1259_v4  ;;  %22 = vst.msk [vmem:[#allocation2] sm:$0xff] %vm21_vm0, %v1259_v4 }
   0x2   :  { %23 = vst.msk [vmem:[#allocation3] sm:$0xff] %vm21_vm0, %v1259_v4  ;;  %v1304_v5 = vpack.c.bf16 %v25_v2, %v24_v1  ;;  %v27_v6 = vld [vmem:[%s1446_s1 + $0x18] sm:$0xff]  ;;  %1151 = vmatprep.subr.bf16.mxu1 %v1257_v0  ;;  %1065 = vmatprep.mubr.msk.f32.mxu1 %vm1258_vm1, %v1259_v4  ;;  %v30_v9 = vld [vmem:[%s1447_s0] sm:$0xff]  ;;  %v971_v30 = vld [vmem:[%s1447_s0 + $0x8] sm:$0xff] }
   0x3   :  { %v1313_v7 = vpack.c.bf16 %v27_v6, %v26_v3  ;;  %v975_v49 = vld [vmem:[%s1447_s0 + $0x10] sm:$0xff] }
   0x4   :  { %1147 = vmatpush3.bf16.msra.mxu0 %v1304_v5  ;;  %1153 = vmatpush3.bf16.msra.mxu1 %v1304_v5 }
   0x5   :  { %1148 = vmatprep.subr.bf16.mxu0 %v1257_v0  ;;  %1154 = vmatprep.subr.bf16.mxu1 %v1257_v0 }
   0x8   :  { %1150 = vmatpush3.bf16.msra.mxu0 %v1313_v7  ;;  %v28_v8 = vld [vmem:[#allocation2] sm:$0xff]  ;;  %1156 = vmatpush3.bf16.msra.mxu1 %v1313_v7 }
   0x9   :  { %1157 = vmatprep.subr.bf16.mxu0 %v1257_v0  ;;  %1163 = vmatprep.subr.bf16.mxu1 %v1257_v0  ;;  %v29_v19 = vld [vmem:[#allocation3] sm:$0xff] }
   0xb   :  { %1055 = vmatmul.mubr.msk.f32.vlgmr.msra.gmra.mrb[0].mxu0 %vm21_vm0, %v28_v8  ;;  %v979_v8 = vld [vmem:[%s1447_s0 + $0x18] sm:$0xff] }
   0xc   :  { %1159 = vmatpush3.bf16.msra.mxu0 %v1304_v5  ;;  %1076 = vmatprep.mubr.msk.f32.mxu0 %vm1258_vm1, %v1259_v4 }
   0xd   :  { %1160 = vmatprep.subr.bf16.mxu0 %v1257_v0 }
  0x10   :  { %1162 = vmatpush3.bf16.msra.mxu0 %v1313_v7 }
  0x11   :  { %1169 = vmatprep.subr.bf16.mxu0 %v1257_v0 }
  0xde   :  { %v101_v10 = vpop.f32.mrb[0].mxu0 }
  0xdf   :  { %v105_v11 = vadd.f32 %v101_v10, %v30_v9  ;;  %v1056_v12 = vpop.f32.mrb[1].mxu0 }
  0xe1   :  { %v969_v13 = vmul.f32 -1.442695, %v105_v11 }
  0xe3   :  { %1205 = vpow2.f32 %v969_v13 }
  0xed   :  { %v1206_v14 = vpop.eup %1205 }
  0xee   :  { %v109_v15 = vadd.f32 1.0, %v1206_v14 }
  0xf0   :  { %1207 = vrcp.f32 %v109_v15 }
  0xfa   :  { %v1208_v16 = vpop.eup %1207 }
  0xfb   :  { %v112_v17 = vmul.f32 2.0, %v1208_v16 }
  0xfd   :  { %v970_v18 = vadd.f32 -1.0, %v112_v17 }
  0xff   :  { %120 = vrot.lane.b32.xlu0 %v970_v18, %s1260_s24 }
 0x103   :  { %115 = vrot.lane.b32.xlu0 %v29_v19, %s1261_s25 }
 0x171   :  { %v121_v20 = vpop.permute.xlu0 %120 }
 0x172   :  { %v123_v21 = vmul.f32 %v1208_v16, %v121_v20 }
 0x174   :  { %125 = vrot.lane.b32.xlu1 %v123_v21, %s1261_s25 }
 0x175   :  { %v116_v22 = vpop.permute.xlu0 %115 }
 0x176   :  { %v118_v23 = vmul.f32 %v1208_v16, %v116_v22 }
 0x1e6   :  { %v126_v24 = vpop.permute.xlu1 %125 }
 0x1e7   :  { %v128_v25 = vadd.f32 %v126_v24, %v118_v23 }
 0x1e9   :  { %1209 = vtanh.f32 %v128_v25 }
 0x1f3   :  { %v1210_v26 = vpop.eup %1209 }
 0x1f4   :  { %131 = vrot.lane.b32.xlu1 %v1210_v26, %s1260_s24 }
 0x266   :  { %v132_v27 = vpop.permute.xlu1 %131 }
 0x267   :  { %v134_v28 = vmul.f32 %v1208_v16, %v132_v27  ;;  %v983_v27 = vld [vmem:[%s1447_s0 + $0x20] sm:$0xff] }
 0x269   :  { %138 = vrot.lane.b32.xlu0 %v134_v28, %s1261_s25 }
 0x2db   :  { %v139_v29 = vpop.permute.xlu0 %138 }
 0x2dc   :  { %1066 = vmatmul.mubr.msk.f32.vlgmr.msra.gmra.mrb[0].mxu1 %vm21_vm0, %v139_v29 }
 0x2dd   :  { %1165 = vmatpush3.bf16.msra.mxu1 %v1304_v5  ;;  %1087 = vmatprep.mubr.msk.f32.mxu1 %vm1258_vm1, %v1259_v4 }
 0x2de   :  { %1166 = vmatprep.subr.bf16.mxu1 %v1257_v0 }
 0x2e1   :  { %1168 = vmatpush3.bf16.msra.mxu1 %v1313_v7 }
 0x2e2   :  { %1175 = vmatprep.subr.bf16.mxu1 %v1257_v0 }
 0x3af   :  { %v208_v31 = vpop.f32.mrb[0].mxu1 }
 0x3b0   :  { %v212_v32 = vadd.f32 %v971_v30, %v208_v31  ;;  %v1067_v33 = vpop.f32.mrb[1].mxu1 }
 0x3b2   :  { %v973_v34 = vmul.f32 -1.442695, %v212_v32 }
 0x3b4   :  { %1211 = vpow2.f32 %v973_v34 }
 0x3be   :  { %v1212_v35 = vpop.eup %1211 }
 0x3bf   :  { %v216_v36 = vadd.f32 1.0, %v1212_v35 }
 0x3c1   :  { %1213 = vrcp.f32 %v216_v36 }
 0x3cb   :  { %v1214_v37 = vpop.eup %1213 }
 0x3cc   :  { %v219_v38 = vmul.f32 2.0, %v1214_v37  ;;  %v221_v42 = vmul.f32 %v1214_v37, %v128_v25 }
 0x3ce   :  { %v974_v39 = vadd.f32 -1.0, %v219_v38 }
 0x3d0   :  { %223 = vrot.lane.b32.xlu1 %v974_v39, %s1260_s24 }
 0x442   :  { %v224_v40 = vpop.permute.xlu1 %223 }
 0x443   :  { %v226_v41 = vmul.f32 %v1214_v37, %v224_v40 }
 0x445   :  { %228 = vrot.lane.b32.xlu0 %v226_v41, %s1261_s25 }
 0x4b7   :  { %v229_v43 = vpop.permute.xlu0 %228 }
 0x4b8   :  { %v231_v44 = vadd.f32 %v229_v43, %v221_v42 }
 0x4ba   :  { %1215 = vtanh.f32 %v231_v44 }
 0x4c4   :  { %v1216_v45 = vpop.eup %1215 }
 0x4c5   :  { %234 = vrot.lane.b32.xlu1 %v1216_v45, %s1260_s24 }
 0x537   :  { %v235_v46 = vpop.permute.xlu1 %234 }
 0x538   :  { %v237_v47 = vmul.f32 %v1214_v37, %v235_v46  ;;  %v987_v46 = vld [vmem:[%s1447_s0 + $0x28] sm:$0xff] }
 0x53a   :  { %241 = vrot.lane.b32.xlu0 %v237_v47, %s1261_s25 }
 0x5ac   :  { %v242_v48 = vpop.permute.xlu0 %241 }
 0x5ad   :  { %1077 = vmatmul.mubr.msk.f32.vlgmr.msra.gmra.mrb[2].mxu0 %vm21_vm0, %v242_v48 }
 0x5ae   :  { %1171 = vmatpush3.bf16.msra.mxu0 %v1304_v5  ;;  %1098 = vmatprep.mubr.msk.f32.mxu0 %vm1258_vm1, %v1259_v4 }
 0x5af   :  { %1172 = vmatprep.subr.bf16.mxu0 %v1257_v0 }
 0x5b2   :  { %1174 = vmatpush3.bf16.msra.mxu0 %v1313_v7 }
 0x5b3   :  { %1181 = vmatprep.subr.bf16.mxu0 %v1257_v0 }
 0x680   :  { %v311_v50 = vpop.f32.mrb[2].mxu0 }
 0x681   :  { %v315_v51 = vadd.f32 %v975_v49, %v311_v50  ;;  %v1078_v52 = vpop.f32.mrb[3].mxu0 }
 0x683   :  { %v977_v53 = vmul.f32 -1.442695, %v315_v51 }
 0x685   :  { %1217 = vpow2.f32 %v977_v53 }
 0x68f   :  { %v1218_v54 = vpop.eup %1217 }
 0x690   :  { %v319_v55 = vadd.f32 1.0, %v1218_v54 }
 0x692   :  { %1219 = vrcp.f32 %v319_v55 }
 0x69c   :  { %v1220_v56 = vpop.eup %1219 }
 0x69d   :  { %v322_v57 = vmul.f32 2.0, %v1220_v56  ;;  %v324_v61 = vmul.f32 %v1220_v56, %v231_v44 }
 0x69f   :  { %v978_v58 = vadd.f32 -1.0, %v322_v57 }
 0x6a1   :  { %326 = vrot.lane.b32.xlu1 %v978_v58, %s1260_s24 }
 0x713   :  { %v327_v59 = vpop.permute.xlu1 %326 }
 0x714   :  { %v329_v60 = vmul.f32 %v1220_v56, %v327_v59 }
 0x716   :  { %331 = vrot.lane.b32.xlu0 %v329_v60, %s1261_s25 }
 0x788   :  { %v332_v62 = vpop.permute.xlu0 %331 }
 0x789   :  { %v334_v63 = vadd.f32 %v332_v62, %v324_v61 }
 0x78b   :  { %1221 = vtanh.f32 %v334_v63 }
 0x795   :  { %v1222_v1 = vpop.eup %1221 }
 0x796   :  { %337 = vrot.lane.b32.xlu1 %v1222_v1, %s1260_s24 }
 0x808   :  { %v338_v2 = vpop.permute.xlu1 %337 }
 0x809   :  { %v340_v3 = vmul.f32 %v1220_v56, %v338_v2 }
 0x80b   :  { %344 = vrot.lane.b32.xlu0 %v340_v3, %s1261_s25 }
 0x87d   :  { %v345_v6 = vpop.permute.xlu0 %344 }
 0x87e   :  { %1088 = vmatmul.mubr.msk.f32.vlgmr.msra.gmra.mrb[2].mxu1 %vm21_vm0, %v345_v6 }
 0x87f   :  { %1177 = vmatpush3.bf16.msra.mxu1 %v1304_v5  ;;  %1109 = vmatprep.mubr.msk.f32.mxu1 %vm1258_vm1, %v1259_v4 }
 0x880   :  { %1178 = vmatprep.subr.bf16.mxu1 %v1257_v0 }
 0x883   :  { %1180 = vmatpush3.bf16.msra.mxu1 %v1313_v7 }
 0x884   :  { %1187 = vmatprep.subr.bf16.mxu1 %v1257_v0 }
 0x951   :  { %v414_v9 = vpop.f32.mrb[2].mxu1 }
 0x952   :  { %v418_v10 = vadd.f32 %v979_v8, %v414_v9  ;;  %v1089_v11 = vpop.f32.mrb[3].mxu1 }
 0x954   :  { %v981_v12 = vmul.f32 -1.442695, %v418_v10 }
 0x956   :  { %1223 = vpow2.f32 %v981_v12 }
 0x960   :  { %v1224_v13 = vpop.eup %1223 }
 0x961   :  { %v422_v14 = vadd.f32 1.0, %v1224_v13 }
 0x963   :  { %1225 = vrcp.f32 %v422_v14 }
 0x96d   :  { %v1226_v15 = vpop.eup %1225 }
 0x96e   :  { %v425_v16 = vmul.f32 2.0, %v1226_v15  ;;  %v427_v20 = vmul.f32 %v1226_v15, %v334_v63  ;;  %v991_v63 = vld [vmem:[%s1447_s0 + $0x30] sm:$0xff] }
 0x970   :  { %v982_v17 = vadd.f32 -1.0, %v425_v16 }
 0x972   :  { %429 = vrot.lane.b32.xlu1 %v982_v17, %s1260_s24 }
 0x9e4   :  { %v430_v18 = vpop.permute.xlu1 %429 }
 0x9e5   :  { %v432_v19 = vmul.f32 %v1226_v15, %v430_v18 }
 0x9e7   :  { %434 = vrot.lane.b32.xlu0 %v432_v19, %s1261_s25 }
 0xa59   :  { %v435_v21 = vpop.permute.xlu0 %434 }
 0xa5a   :  { %v437_v22 = vadd.f32 %v435_v21, %v427_v20  ;;  %v995_v21 = vld [vmem:[%s1447_s0 + $0x38] sm:$0xff] }
 0xa5c   :  { %1227 = vtanh.f32 %v437_v22 }
 0xa66   :  { %v1228_v23 = vpop.eup %1227 }
 0xa67   :  { %440 = vrot.lane.b32.xlu1 %v1228_v23, %s1260_s24 }
 0xad9   :  { %v441_v24 = vpop.permute.xlu1 %440 }
 0xada   :  { %v443_v25 = vmul.f32 %v1226_v15, %v441_v24 }
 0xadc   :  { %447 = vrot.lane.b32.xlu0 %v443_v25, %s1261_s25 }
 0xb4e   :  { %v448_v26 = vpop.permute.xlu0 %447 }
 0xb4f   :  { %1099 = vmatmul.mubr.msk.f32.vlgmr.msra.gmra.mrb[4].mxu0 %vm21_vm0, %v448_v26 }
 0xb50   :  { %1183 = vmatpush3.bf16.msra.mxu0 %v1304_v5  ;;  %1120 = vmatprep.mubr.msk.f32.mxu0 %vm1258_vm1, %v1259_v4 }
 0xb51   :  { %1184 = vmatprep.subr.bf16.mxu0 %v1257_v0 }
 0xb54   :  { %1186 = vmatpush3.bf16.msra.mxu0 %v1313_v7 }
 0xb55   :  { %1193 = vmatprep.subr.bf16.mxu0 %v1257_v0 }
 0xc22   :  { %v517_v28 = vpop.f32.mrb[4].mxu0 }
 0xc23   :  { %v521_v29 = vadd.f32 %v983_v27, %v517_v28  ;;  %v1100_v30 = vpop.f32.mrb[5].mxu0 }
 0xc25   :  { %v985_v31 = vmul.f32 -1.442695, %v521_v29 }
 0xc27   :  { %1229 = vpow2.f32 %v985_v31 }
 0xc31   :  { %v1230_v32 = vpop.eup %1229 }
 0xc32   :  { %v525_v33 = vadd.f32 1.0, %v1230_v32 }
 0xc34   :  { %1231 = vrcp.f32 %v525_v33 }
 0xc3e   :  { %v1232_v34 = vpop.eup %1231 }
 0xc3f   :  { %v528_v35 = vmul.f32 2.0, %v1232_v34  ;;  %v530_v39 = vmul.f32 %v1232_v34, %v437_v22 }
 0xc41   :  { %v986_v36 = vadd.f32 -1.0, %v528_v35 }
 0xc43   :  { %532 = vrot.lane.b32.xlu1 %v986_v36, %s1260_s24  ;;  %v869_v36 = vld [vmem:[%s1448_s2] sm:$0xff] }
 0xcb5   :  { %v533_v37 = vpop.permute.xlu1 %532 }
 0xcb6   :  { %v535_v38 = vmul.f32 %v1232_v34, %v533_v37  ;;  %v870_v37 = vld [vmem:[%s1448_s2 + $0x8] sm:$0xff] }
 0xcb8   :  { %537 = vrot.lane.b32.xlu0 %v535_v38, %s1261_s25  ;;  %v871_v38 = vld [vmem:[%s1448_s2 + $0x10] sm:$0xff] }
 0xd2a   :  { %v538_v40 = vpop.permute.xlu0 %537 }
 0xd2b   :  { %v540_v41 = vadd.f32 %v538_v40, %v530_v39  ;;  %v1194_v39 = vpack.c.bf16 %v870_v37, %v869_v36  ;;  %v872_v40 = vld [vmem:[%s1448_s2 + $0x18] sm:$0xff]  ;;  %s1262_s2 = smov 96  }
 0xd2d   :  { %1233 = vtanh.f32 %v540_v41 }
 0xd37   :  { %v1234_v42 = vpop.eup %1233 }
 0xd38   :  { %543 = vrot.lane.b32.xlu1 %v1234_v42, %s1260_s24 }
 0xdaa   :  { %v544_v43 = vpop.permute.xlu1 %543 }
 0xdab   :  { %v546_v44 = vmul.f32 %v1232_v34, %v544_v43 }
 0xdad   :  { %550 = vrot.lane.b32.xlu0 %v546_v44, %s1261_s25 }
 0xe1f   :  { %v551_v45 = vpop.permute.xlu0 %550 }
 0xe20   :  { %1110 = vmatmul.mubr.msk.f32.vlgmr.msra.gmra.mrb[4].mxu1 %vm21_vm0, %v551_v45 }
 0xe21   :  { %1189 = vmatpush3.bf16.msra.mxu1 %v1304_v5  ;;  %1131 = vmatprep.mubr.msk.f32.mxu1 %vm1258_vm1, %v1259_v4 }
 0xe22   :  { %1190 = vmatprep.subr.bf16.mxu1 %v1257_v0 }
 0xe25   :  { %1192 = vmatpush3.bf16.msra.mxu1 %v1313_v7 }
 0xef3   :  { %v620_v47 = vpop.f32.mrb[4].mxu1 }
 0xef4   :  { %v624_v48 = vadd.f32 %v987_v46, %v620_v47  ;;  %v1111_v49 = vpop.f32.mrb[5].mxu1  ;;  %v999_v46 = vld [vmem:[%s1449_s3] ss:$0 sm:$0xff] }
 0xef6   :  { %v989_v50 = vmul.f32 -1.442695, %v624_v48 }
 0xef8   :  { %1235 = vpow2.f32 %v989_v50 }
 0xf02   :  { %v1236_v51 = vpop.eup %1235 }
 0xf03   :  { %v628_v52 = vadd.f32 1.0, %v1236_v51 }
 0xf05   :  { %1237 = vrcp.f32 %v628_v52 }
 0xf0f   :  { %v1238_v5 = vpop.eup %1237 }
 0xf10   :  { %v631_v53 = vmul.f32 2.0, %v1238_v5  ;;  %v633_v7 = vmul.f32 %v1238_v5, %v540_v41  ;;  %v1197_v41 = vpack.c.bf16 %v872_v40, %v871_v38 }
 0xf12   :  { %v990_v54 = vadd.f32 -1.0, %v631_v53 }
 0xf14   :  { %635 = vrot.lane.b32.xlu1 %v990_v54, %s1260_s24 }
 0xf86   :  { %v636_v55 = vpop.permute.xlu1 %635 }
 0xf87   :  { %v638_v56 = vmul.f32 %v1238_v5, %v636_v55 }
 0xf89   :  { %640 = vrot.lane.b32.xlu0 %v638_v56, %s1261_s25 }
 0xffb   :  { %v641_v57 = vpop.permute.xlu0 %640 }
 0xffc   :  { %v643_v58 = vadd.f32 %v641_v57, %v633_v7 }
 0xffe   :  { %1239 = vtanh.f32 %v643_v58 }
0x1008   :  { %v1240_v59 = vpop.eup %1239 }
0x1009   :  { %646 = vrot.lane.b32.xlu1 %v1240_v59, %s1260_s24 }
0x107b   :  { %v647_v60 = vpop.permute.xlu1 %646 }
0x107c   :  { %v649_v61 = vmul.f32 %v1238_v5, %v647_v60 }
0x107e   :  { %653 = vrot.lane.b32.xlu0 %v649_v61, %s1261_s25 }
0x10f0   :  { %v654_v62 = vpop.permute.xlu0 %653 }
0x10f1   :  { %1121 = vmatmul.mubr.msk.f32.vlgmr.msra.gmra.mrb[6].mxu0 %vm21_vm0, %v654_v62 }
0x10f2   :  { %1142 = vmatprep.mubr.msk.f32.mxu0 %vm1258_vm1, %v1259_v4  ;;  %1195 = vmatpush3.bf16.msra.mxu0 %v1194_v39 }
0x10f3   :  { %1196 = vmatprep.subr.bf16.mxu0 %v1257_v0 }
0x10f6   :  { %1198 = vmatpush3.bf16.msra.mxu0 %v1197_v41 }
0x11c4   :  { %v723_v1 = vpop.f32.mrb[6].mxu0 }
0x11c5   :  { %v727_v2 = vadd.f32 %v991_v63, %v723_v1  ;;  %v1122_v3 = vpop.f32.mrb[7].mxu0 }
0x11c7   :  { %v993_v6 = vmul.f32 -1.442695, %v727_v2 }
0x11c9   :  { %1241 = vpow2.f32 %v993_v6 }
0x11d3   :  { %v1242_v8 = vpop.eup %1241 }
0x11d4   :  { %v731_v9 = vadd.f32 1.0, %v1242_v8 }
0x11d6   :  { %1243 = vrcp.f32 %v731_v9 }
0x11e0   :  { %v1244_v10 = vpop.eup %1243 }
0x11e1   :  { %v734_v11 = vmul.f32 2.0, %v1244_v10  ;;  %v736_v4 = vmul.f32 %v1244_v10, %v643_v58 }
0x11e3   :  { %v994_v12 = vadd.f32 -1.0, %v734_v11 }
0x11e5   :  { %738 = vrot.lane.b32.xlu1 %v994_v12, %s1260_s24 }
0x1257   :  { %v739_v13 = vpop.permute.xlu1 %738 }
0x1258   :  { %v741_v14 = vmul.f32 %v1244_v10, %v739_v13 }
0x125a   :  { %743 = vrot.lane.b32.xlu0 %v741_v14, %s1261_s25 }
0x12cc   :  { %v744_v15 = vpop.permute.xlu0 %743 }
0x12cd   :  { %v746_v16 = vadd.f32 %v744_v15, %v736_v4 }
0x12cf   :  { %1245 = vtanh.f32 %v746_v16 }
0x12d9   :  { %v1246_v17 = vpop.eup %1245 }
0x12da   :  { %749 = vrot.lane.b32.xlu1 %v1246_v17, %s1260_s24 }
0x134c   :  { %v750_v18 = vpop.permute.xlu1 %749 }
0x134d   :  { %v752_v19 = vmul.f32 %v1244_v10, %v750_v18 }
0x134f   :  { %756 = vrot.lane.b32.xlu0 %v752_v19, %s1261_s25 }
0x13c1   :  { %v757_v20 = vpop.permute.xlu0 %756 }
0x13c2   :  { %1132 = vmatmul.mubr.msk.f32.vlgmr.msra.gmra.mrb[6].mxu1 %vm21_vm0, %v757_v20 }
0x1495   :  { %v826_v22 = vpop.f32.mrb[6].mxu1 }
0x1496   :  { %v830_v23 = vadd.f32 %v995_v21, %v826_v22  ;;  %v1133_v24 = vpop.f32.mrb[7].mxu1 }
0x1498   :  { %v997_v25 = vmul.f32 -1.442695, %v830_v23 }
0x149a   :  { %1247 = vpow2.f32 %v997_v25 }
0x14a4   :  { %v1248_v26 = vpop.eup %1247 }
0x14a5   :  { %v834_v27 = vadd.f32 1.0, %v1248_v26 }
0x14a7   :  { %1249 = vrcp.f32 %v834_v27 }
0x14b1   :  { %v1250_v28 = vpop.eup %1249 }
0x14b2   :  { %v837_v29 = vmul.f32 2.0, %v1250_v28  ;;  %v839_v33 = vmul.f32 %v1250_v28, %v746_v16 }
0x14b4   :  { %v998_v30 = vadd.f32 -1.0, %v837_v29 }
0x14b6   :  { %841 = vrot.lane.b32.xlu1 %v998_v30, %s1260_s24 }
0x1528   :  { %v842_v31 = vpop.permute.xlu1 %841 }
0x1529   :  { %v844_v32 = vmul.f32 %v1250_v28, %v842_v31 }
0x152b   :  { %846 = vrot.lane.b32.xlu0 %v844_v32, %s1261_s25 }
0x159d   :  { %v847_v34 = vpop.permute.xlu0 %846 }
0x159e   :  { %v849_v35 = vadd.f32 %v847_v34, %v839_v33 }
0x15a0   :  { %1251 = vtanh.f32 %v849_v35 }
0x15aa   :  { %v1252_v42 = vpop.eup %1251 }
0x15ab   :  { %852 = vrot.lane.b32.xlu1 %v1252_v42, %s1260_s24 }
0x161d   :  { %v853_v43 = vpop.permute.xlu1 %852 }
0x161e   :  { %v855_v44 = vmul.f32 %v1250_v28, %v853_v43 }
0x1620   :  { %857 = vrot.lane.b32.xlu0 %v855_v44, %s1261_s25 }
0x1692   :  { %v858_v45 = vpop.permute.xlu0 %857 }
0x1693   :  { %860 = vst.msk [vmem:[#allocation2] sm:$0xff] %vm21_vm0, %v858_v45  ;;  %1143 = vmatmul.mubr.msk.f32.vlgmr.msra.gmra.mrb[8].mxu0 %vm21_vm0, %v858_v45 }
0x1766   :  { %v948_v47 = vpop.f32.mrb[8].mxu0 }
0x1767   :  { %v949_v48 = vadd.f32 %v999_v46, %v948_v47  ;;  %v1144_v0 = vpop.f32.mrb[9].mxu0 }
0x1769   :  { %952 = vmax.xlane.f32.xlu1 %v949_v48 }
0x17f6   :  { %v953_v49 = vpop.xlane.xlu1 %952 }
0x17f7   :  { %v954_v50 = vsub.f32 %v949_v48, %v953_v49 }
0x17f9   :  { %v955_v51 = vmul.f32 1.442695, %v954_v50 }
0x17fb   :  { %1253 = vpow2.f32 %v955_v51 }
0x1805   :  { %v1254_v52 = vpop.eup %1253 }
0x1806   :  { %957 = vadd.xlane.f32.xlu0 %v1254_v52 }
0x181c   :  { %862 = vrot.lane.b32.xlu0 %v849_v35, %s1262_s2 }
0x1893   :  { %v958_v5 = vpop.xlane.xlu0 %957 }
0x1894   :  { %1255 = vlog2.f32 %v958_v5 }
0x1897   :  { %v863_v53 = vpop.permute.xlu0 %862 }
0x1898   :  { %865 = vst.msk [vmem:[#allocation3] sm:$0xff] %vm21_vm0, %v863_v53 }
0x189e   :  { %v1256_v54 = vpop.eup %1255 }
0x189f   :  { %v960_v55 = vmul.f32 0.6931472, %v1256_v54 }
0x18a1   :  { %v961_v56 = vadd.f32 %v960_v55, %v953_v49 }
0x18a3   :  { %v962_v7 = vsub.f32 %v949_v48, %v961_v56 }
0x18a5   :  { %963 = vst [vmem:[%s1450_s4] sm:$0xff] %v962_v7 }

</bundles_post_ra>
